<compile_context>
chip_gen: v6e
topology: v6e:2x2x1
jax: 0.10.0
libtpu: 0.0.40
codegen_flags: <defaults>
</compile_context>

<pallas_src>
import functools
import numpy as np
import jax
import jax.numpy as jnp
from jax import lax
from jax.experimental import pallas as pl
from jax.experimental.pallas import tpu as pltpu


def _pad_value(dtype):
    dtype = jnp.dtype(dtype)
    if dtype == jnp.dtype(jnp.bool_):
        return True
    if jnp.issubdtype(dtype, jnp.floating):
        return float(jnp.finfo(dtype).max)
    return int(jnp.iinfo(dtype).max)


def _erosion_kernel(x_ref, o_ref, *, offsets, W, L, pad_val):
    """Separable masked d x d min-filter on a (blk, H*W) lane-flat block."""
    x = x_ref[...]                                        # (blk, L), L = H*W
    flat = lax.broadcasted_iota(jnp.int32, x.shape, 1)    # flattened pixel idx
    if W & (W - 1) == 0:
        col = flat & (W - 1)                              # cheap pow2 "mod W"
    else:
        col = flat % W

    def shifted(a, s):
        # a advanced by s along the flattened pixel axis: out[i] = a[(i+s)%L]
        return pltpu.roll(a, (-s) % L, 1)

    # Vertical pass: min over row offsets dr  (lane shift of dr*W).
    # Wrapped / out-of-image rows are masked to the dtype max.
    v = x
    for dr in offsets:
        if dr == 0:
            continue
        g = shifted(x, dr * W)
        valid = (flat < L - dr * W) if dr > 0 else (flat >= (-dr) * W)
        v = jnp.minimum(v, jnp.where(valid, g, pad_val))

    # Horizontal pass: min over column offsets dc (lane shift of dc).
    # Positions whose window crosses a row edge are masked to the dtype max.
    out = v
    for dc in offsets:
        if dc == 0:
            continue
        g = shifted(v, dc)
        valid = (col < W - dc) if dc > 0 else (col >= -dc)
        out = jnp.minimum(out, jnp.where(valid, g, pad_val))

    o_ref[...] = out


def _erosion_fixed_d(x, d, *, block_bytes=2 << 20):
    """Flat d x d erosion of x: (N, H, W) with a static kernel size d."""
    N, H, W = x.shape
    if d <= 1:
        return x
    L = H * W
    xf = x.reshape(N, L)                  # free: collapses contiguous minor dims

    per_img = L * x.dtype.itemsize
    blk = max(1, block_bytes // per_img)  # images per grid step (byte budget)
    blk = min(blk, N)
    if N > 8:
        blk = min(blk, pl.cdiv(N, 2))     # keep >= 2 grid steps (v7x megacore)
        blk = max(8, blk - blk % 8)       # sublane-aligned block rows
        blk = min(blk, N)
    grid = (pl.cdiv(N, blk),)             # partial last block is masked by Pallas

    offsets = tuple(k - d // 2 for k in range(d))
    kernel = functools.partial(_erosion_kernel, offsets=offsets, W=W, L=L,
                               pad_val=_pad_value(x.dtype))
    out = pl.pallas_call(
        kernel,
        out_shape=jax.ShapeDtypeStruct((N, L), x.dtype),
        grid=grid,
        in_specs=[pl.BlockSpec((blk, L), lambda i: (i, 0))],
        out_specs=pl.BlockSpec((blk, L), lambda i: (i, 0)),
        compiler_params=pltpu.CompilerParams(
            dimension_semantics=("parallel",),
            vmem_limit_bytes=48 * 1024 * 1024),
    )(xf)
    return out.reshape(N, H, W)


def random_erosion(image, *, p: float, kernel_size_low: int,
                   kernel_size_high: int, seed: int = 0):
    """Pallas TPU implementation of RandomErosion.forward (NCHW image)."""
    orig_shape = image.shape
    *lead, H, W = image.shape
    N = int(np.prod(lead)) if lead else 1
    x = image.reshape(N, H, W)

    sizes = list(range(kernel_size_low, kernel_size_high + 1, 2))

    # ---- glue: the two tiny random draws of the module (plain JAX) --------
    key = jax.random.PRNGKey(seed)
    k_gate, k_idx = jax.random.split(key)
    apply_gate = jax.random.uniform(k_gate, ()) < p            # torch.rand(1) < p
    kernel_idx = jax.random.randint(k_idx, (), 0, len(sizes))  # torch.randint

    branches = [functools.partial(_erosion_fixed_d, d=d) for d in sizes]

    def do_erode(img):
        if len(sizes) == 1:
            return branches[0](img)
        return lax.switch(kernel_idx, branches, img)

    out = lax.cond(apply_gate, do_erode, lambda img: img, x)
    return out.reshape(orig_shape)


if __name__ == "__main__":
    key = jax.random.PRNGKey(0)
    # small NCHW input: (batch=2, channels=4, 16, 16)
    x = jax.random.normal(key, (2, 4, 16, 16), dtype=jnp.float32)

    # --- deterministic erosion path vs. a plain-numpy min-pool reference ----
    x3 = np.asarray(x).reshape(-1, 16, 16)
    cands = []
    for d in (3, 5):
        y = jax.block_until_ready(_erosion_fixed_d(x.reshape(-1, 16, 16), d))
        pad = d // 2
        xp = np.pad(x3, ((0, 0), (pad, pad), (pad, pad)),
                    constant_values=np.finfo(np.float32).max)
        ref = np.full_like(x3, np.finfo(np.float32).max)
        for i in range(d):
            for j in range(d):
                ref = np.minimum(ref, xp[:, i:i + 16, j:j + 16])
        np.testing.assert_allclose(np.asarray(y), ref, rtol=1e-6, atol=0)
        cands.append(ref.reshape(x.shape))

    # --- full random wrapper -------------------------------------------------
    y1 = jax.block_until_ready(
        random_erosion(x, p=1.0, kernel_size_low=3, kernel_size_high=5, seed=0))
    assert y1.shape == x.shape and y1.dtype == x.dtype
    assert bool(jnp.all(y1 <= x))          # erosion never increases values
    assert any(np.array_equal(np.asarray(y1), c) for c in cands)

    y0 = jax.block_until_ready(
        random_erosion(x, p=0.0, kernel_size_low=3, kernel_size_high=5, seed=0))
    assert bool(jnp.all(y0 == x))          # gated off -> identity

    print("KERNEL_OK")
</pallas_src>

<mosaic_0001>
module attributes {stable_mosaic.version = 11 : i64} {
  func.func @_erosion_kernel(%arg0: i32, %arg1: memref<8x256xf32, #tpu.memory_space<vmem>>, %arg2: memref<8x256xf32, #tpu.memory_space<vmem>>) attributes {dimension_semantics = [#tpu.dimension_semantics<parallel>], iteration_bounds = array<i64: 1>, scalar_prefetch = 0 : i64, scratch_operands = 0 : i64, tpu.core_type = #tpu.core_type<tc>, window_params = [{transform_indices = @transform_0, window_bounds = array<i64: 8, 256>}, {transform_indices = @transform_1, window_bounds = array<i64: 8, 256>}]} {
    %c0 = arith.constant 0 : index
    %c0_0 = arith.constant 0 : index
    %0 = vector.load %arg1[%c0, %c0_0] : memref<8x256xf32, #tpu.memory_space<vmem>>, vector<8x256xf32>
    %1 = tpu.iota {dimensions = array<i32: 1>} : vector<8x256xi32>
    %c15_i32 = arith.constant 15 : i32
    %2 = vector.broadcast %c15_i32 : i32 to vector<8x256xi32>
    %3 = arith.andi %1, %2 : vector<8x256xi32>
    %c16_i32 = arith.constant 16 : i32
    %4 = tpu.dynamic_rotate %0 by %c16_i32 dim 1 : vector<8x256xf32>, i32 -> vector<8x256xf32>
    %c16_i32_1 = arith.constant 16 : i32
    %5 = vector.broadcast %c16_i32_1 : i32 to vector<8x256xi32>
    %6 = arith.cmpi sge, %1, %5 : vector<8x256xi32>
    %cst = arith.constant 3.40282347E+38 : f32
    %7 = vector.broadcast %cst : f32 to vector<8x256xf32>
    %8 = arith.select %6, %4, %7 : vector<8x256xi1>, vector<8x256xf32>
    %9 = arith.minimumf %0, %8 : vector<8x256xf32>
    %c240_i32 = arith.constant 240 : i32
    %10 = tpu.dynamic_rotate %0 by %c240_i32 dim 1 : vector<8x256xf32>, i32 -> vector<8x256xf32>
    %c240_i32_2 = arith.constant 240 : i32
    %11 = vector.broadcast %c240_i32_2 : i32 to vector<8x256xi32>
    %12 = arith.cmpi slt, %1, %11 : vector<8x256xi32>
    %cst_3 = arith.constant 3.40282347E+38 : f32
    %13 = vector.broadcast %cst_3 : f32 to vector<8x256xf32>
    %14 = arith.select %12, %10, %13 : vector<8x256xi1>, vector<8x256xf32>
    %15 = arith.minimumf %9, %14 : vector<8x256xf32>
    %c1_i32 = arith.constant 1 : i32
    %16 = tpu.dynamic_rotate %15 by %c1_i32 dim 1 : vector<8x256xf32>, i32 -> vector<8x256xf32>
    %c1_i32_4 = arith.constant 1 : i32
    %17 = vector.broadcast %c1_i32_4 : i32 to vector<8x256xi32>
    %18 = arith.cmpi sge, %3, %17 : vector<8x256xi32>
    %cst_5 = arith.constant 3.40282347E+38 : f32
    %19 = vector.broadcast %cst_5 : f32 to vector<8x256xf32>
    %20 = arith.select %18, %16, %19 : vector<8x256xi1>, vector<8x256xf32>
    %21 = arith.minimumf %15, %20 : vector<8x256xf32>
    %c255_i32 = arith.constant 255 : i32
    %22 = tpu.dynamic_rotate %15 by %c255_i32 dim 1 : vector<8x256xf32>, i32 -> vector<8x256xf32>
    %c15_i32_6 = arith.constant 15 : i32
    %23 = vector.broadcast %c15_i32_6 : i32 to vector<8x256xi32>
    %24 = arith.cmpi slt, %3, %23 : vector<8x256xi32>
    %cst_7 = arith.constant 3.40282347E+38 : f32
    %25 = vector.broadcast %cst_7 : f32 to vector<8x256xf32>
    %26 = arith.select %24, %22, %25 : vector<8x256xi1>, vector<8x256xf32>
    %27 = arith.minimumf %21, %26 : vector<8x256xf32>
    %c0_8 = arith.constant 0 : index
    %c0_9 = arith.constant 0 : index
    %28 = vector.load %arg2[%c0_8, %c0_9] : memref<8x256xf32, #tpu.memory_space<vmem>>, vector<8x256xf32>
    tpu.vector_store %arg2[%c0_8, %c0_9], %27 {strides = array<i32>} : memref<8x256xf32, #tpu.memory_space<vmem>>, vector<8x256xf32>,
    return
  }
  func.func @transform_0(%arg0: i32) -> (i32, i32) {
    %c0_i32 = arith.constant 0 : i32
    %c0_i32_0 = arith.constant 0 : i32
    return %arg0, %c0_i32 : i32, i32
  }
  func.func @transform_1(%arg0: i32) -> (i32, i32) {
    %c0_i32 = arith.constant 0 : i32
    %c0_i32_0 = arith.constant 0 : i32
    return %arg0, %c0_i32 : i32, i32
  }
}

</mosaic_0001>

<bundles_post_ra>
// kernel: tpu_custom_call.1
= control target key start
LH: loop header
LB: loop body
LE: loop exit
PB: predicated region body
PF: predicated region fallthrough
CT: control target
= control target key end

     0   :  { %6 = vsyncpa [#allocation3], 0  ;;  %s169_s0 = inlined_call_operand.hbm [shape: f32[8,256], index: 0, kind: input, shape index: {}]   ;;  %s170_s1 = inlined_call_operand.hbm [shape: f32[8,256], index: 1, kind: output, shape index: {}]  }
   0x1   :  { %7 = vsyncpa [#allocation4], 0  ;;  %s147_s6 = smov [#allocation2]  }
   0x2   :  { %s14_s7 = sshll.u32 %s147_s6, 4  ;;  %s15_s7 = int_to_ptr.vmem [resolvable:$true] %s14_s7 }
   0x3   :  { %s111_s8 = scalar_lea.vmem %s15_s7, 256  ;;  %p116_p1 = scmp.lt.s32.totalorder %s15_s7, %s15_s7 }
   0x4   :  { %p112_p0 = scmp.ne.s32.totalorder %s15_s7, %s111_s8  ;;  %p117_p2 = scmp.lt.s32.totalorder %s111_s8, %s111_s8 }
   0x6   :  { %p118_p3 = por %p117_p2, %p116_p1 }
   0x8   :  { %p119_p4 = pnand %p118_p3, %p112_p0 }
   0xa   :  { %122 = shalt.err (!%p119_p4)
}
   0xb   :  { %17 = dma.hbm_to_vmem [thread:$0]  %s169_s0, 256, %s15_s7, [#allocation3]  }
   0xc   :  { %143 = dma.done.wait [#allocation3], 256  }
   0xd   :  { %144 = vsyncadd [#allocation3], 4294967040  ;;  %v21_v0 = vld [vmem:[#allocation2] sm:$0xff]  ;;  %s148_s11 = smov 112   ;;  %s149_s12 = smov 16   ;;  %v22_v1 = vld [vmem:[#allocation2 + $0x8] sm:$0xff]  ;;  %v23_v2 = vlaneseq }
   0xe   :  { %41 = vrot.lane.b32.xlu1 %v21_v0, %s148_s11  ;;  %28 = vrot.lane.b32.xlu0 %v21_v0, %s149_s12  ;;  %s150_s0 = smov 1   ;;  %s151_s13 = smov 127  }
   0xf   :  { %v24_v3 = vand.u32 127, %v23_v2  ;;  %s152_s14 = smov [#allocation5]  }
  0x10   :  { %s88_s15 = sshll.u32 %s152_s14, 4  ;;  %s89_s15 = int_to_ptr.vmem [resolvable:$true] %s88_s15 }
  0x11   :  { %v25_v4 = vadd.s32 128, %v24_v3  ;;  %vm45_vm0 = vcmp.lt.s32.totalorder %v24_v3, 112  ;;  %vm32_vm1 = vcmp.lt.s32.totalorder %v24_v3, 16  ;;  %vm35_vm3 = vcmp.ge.s32.totalorder %v24_v3, 16  ;;  %s123_s16 = scalar_lea.vmem %s89_s15, 256  ;;  %p128_p6 = scmp.lt.s32.totalorder %s89_s15, %s89_s15 }
  0x12   :  { %43 = vrot.lane.b32.xlu1 %v22_v1, %s148_s11  ;;  %30 = vrot.lane.b32.xlu0 %v22_v1, %s149_s12  ;;  %v26_v19 = vand.u32 15, %v24_v3  ;;  %vm58_vm4 = vcmp.lt.s32.totalorder %v24_v3, 1  ;;  %vm71_vm7 = vcmp.lt.s32.totalorder %v24_v3, 127  ;;  %p124_p5 = scmp.ne.s32.totalorder %s89_s15, %s123_s16  ;;  %p129_p7 = scmp.lt.s32.totalorder %s123_s16, %s123_s16 }
  0x13   :  { %vm49_vm2 = vcmp.lt.s32.totalorder %v25_v4, 240  ;;  %v27_v20 = vand.u32 15, %v25_v4 }
  0x14   :  { %vm61_vm5 = vcmp.ge.s32.totalorder %v26_v19, 1  ;;  %vm74_vm8 = vcmp.lt.s32.totalorder %v26_v19, 15  ;;  %p130_p8 = por %p129_p7, %p128_p6 }
  0x15   :  { %vm62_vm6 = vcmp.ge.s32.totalorder %v27_v20, 1  ;;  %vm75_vm9 = vcmp.lt.s32.totalorder %v27_v20, 15 }
  0x16   :  { %p131_p9 = pnand %p130_p8, %p124_p5 }
  0x80   :  { %v42_v5 = vpop.permute.xlu1 %41  ;;  %v29_v6 = vpop.permute.xlu0 %28 }
  0x84   :  { %v44_v7 = vpop.permute.xlu1 %43  ;;  %v31_v8 = vpop.permute.xlu0 %30 }
  0x85   :  { %v47_v9 = vsel %vm45_vm0, %v44_v7, %v42_v5  ;;  %v33_v10 = vsel %vm32_vm1, %v29_v6, %v31_v8  ;;  %v34_v11 = vsel %vm32_vm1, %v31_v8, %v29_v6  ;;  %v46_v16 = vsel %vm45_vm0, %v42_v5, %v44_v7 }
  0x86   :  { %v51_v12 = vsel %vm49_vm2, %v47_v9, 3.4028235e+38  ;;  %v37_v13 = vsel %vm35_vm3, %v34_v11, 3.4028235e+38  ;;  %v40_v14 = vmin.f32 %v22_v1, %v33_v10 }
  0x87   :  { %v39_v15 = vmin.f32 %v21_v0, %v37_v13 }
  0x88   :  { %v53_v17 = vmin.f32 %v40_v14, %v51_v12 }
  0x89   :  { %v52_v18 = vmin.f32 %v39_v15, %v46_v16 }
  0x8a   :  { %56 = vrot.lane.b32.xlu1 %v53_v17, %s150_s0 }
  0x8b   :  { %54 = vrot.lane.b32.xlu0 %v52_v18, %s150_s0 }
  0x8e   :  { %69 = vrot.lane.b32.xlu1 %v53_v17, %s151_s13 }
  0x8f   :  { %67 = vrot.lane.b32.xlu0 %v52_v18, %s151_s13 }
  0xfc   :  { %v57_v21 = vpop.permute.xlu1 %56 }
  0xfd   :  { %v55_v22 = vpop.permute.xlu0 %54 }
  0xfe   :  { %v59_v23 = vsel %vm58_vm4, %v55_v22, %v57_v21  ;;  %v60_v24 = vsel %vm58_vm4, %v57_v21, %v55_v22 }
  0xff   :  { %v63_v25 = vsel %vm61_vm5, %v60_v24, 3.4028235e+38  ;;  %v64_v26 = vsel %vm62_vm6, %v59_v23, 3.4028235e+38 }
 0x100   :  { %v70_v27 = vpop.permute.xlu1 %69  ;;  %v65_v29 = vmin.f32 %v52_v18, %v63_v25  ;;  %v66_v30 = vmin.f32 %v53_v17, %v64_v26 }
 0x101   :  { %v68_v28 = vpop.permute.xlu0 %67 }
 0x102   :  { %v72_v31 = vsel %vm71_vm7, %v68_v28, %v70_v27  ;;  %v73_v32 = vsel %vm71_vm7, %v70_v27, %v68_v28 }
 0x103   :  { %v76_v33 = vsel %vm74_vm8, %v72_v31, 3.4028235e+38  ;;  %v77_v34 = vsel %vm75_vm9, %v73_v32, 3.4028235e+38 }
 0x104   :  { %v78_v35 = vmin.f32 %v65_v29, %v76_v33  ;;  %v79_v36 = vmin.f32 %v66_v30, %v77_v34 }
 0x106   :  { %80 = vst [vmem:[#allocation5] sm:$0xff] %v78_v35  ;;  %81 = vst [vmem:[#allocation5 + $0x8] sm:$0xff] %v79_v36 }
 0x107   :  { %134 = shalt.err (!%p131_p9)
}
 0x108   :  { %91 = dma.vmem_to_hbm [thread:$0]  %s89_s15, 256, %s170_s1, [#allocation4]  }
 0x109   :  { %145 = dma.done.wait [#allocation4], 256  }
 0x10a   :  { %146 = vsyncadd [#allocation4], 4294967040 }
 0x10b   :  { %95 = vsyncpa [#allocation3], 1 }
 0x10c   :  { %96 = vsyncpa [#allocation4], 1 }

</bundles_post_ra>
